<compile_context>
chip_gen: v7x
topology: tpu7x:2x2x1
jax: 0.10.0
libtpu: 0.0.40
codegen_flags: <defaults>
</compile_context>

<pallas_src>
import jax
import jax.numpy as jnp
import numpy as np
from jax.experimental import pallas as pl
from jax.experimental.pallas import tpu as pltpu

_LANES = 128
# Pipeline-buffer budget (double-buffering already accounted for) and scoped
# VMEM limit: 32 MiB keeps headroom on v7x's 64 MiB VMEM and raises v5e's
# 16 MiB default.
_VMEM_BUDGET_BYTES = 20 * 1024 * 1024
_VMEM_LIMIT_BYTES = 32 * 1024 * 1024


def _add_pe_kernel(x_ref, pe_ref, o_ref):
    # x_ref / o_ref: (bt, ts, W) tile; pe_ref: matching (ts, W) PE rows.
    # The cast is a no-op when the wrapper already pre-cast the PE operand;
    # PE rows broadcast over the batch sub-dim of the block.
    pe = pe_ref[...].astype(o_ref.dtype)
    o_ref[...] = x_ref[...] + pe[None, :, :]


def _pick_row_tile(n_rows, sub, cap_rows):
    """Rows per block along the tiled sequence-row axis.

    Preference order:
      1. the whole extent if it fits the VMEM cap (single tile, no edge blocks),
      2. the largest multiple of `sub` that divides n_rows and fits the cap
         (clean tiling, no ragged edge blocks),
      3. the largest multiple of `sub` that fits the cap (ragged final block;
         Pallas pads reads / drops out-of-bounds writes on edge blocks), which
         avoids the old failure mode of a single huge full-extent block for
         long, sublane-unaligned sequences.
    """
    cap = max(sub, cap_rows)
    if n_rows <= cap:
        return n_rows
    if n_rows % sub == 0:
        best, t = sub, sub
        while t <= cap:
            if n_rows % t == 0:
                best = t
            t += sub
        return best
    return max(sub, (cap // sub) * sub)


def _run_add(x3, pe_op, ts):
    """x3: (B, R, W); pe_op: (>=R_used, W) PE rows (row r pairs with x3 row r)."""
    B, R, W = x3.shape
    dx = jnp.dtype(x3.dtype).itemsize
    dpe = jnp.dtype(pe_op.dtype).itemsize

    n_row = int(pl.cdiv(R, ts))

    # Tiny-problem fast path: collapse the batch axis into the block when the
    # whole row range is a single comfortable tile -> fewer, larger grid steps.
    bt = 1
    if n_row == 1:
        per_batch = 2 * R * W * 2 * dx            # double-buffered x + out per batch elem
        bt = int(max(1, min(B, _VMEM_BUDGET_BYTES // max(per_batch, 1))))
        while B % bt != 0:                        # keep batch blocks non-ragged
            bt -= 1
    n_batch = B // bt

    grid = (n_row, n_batch)
    # Row axis leads and is "parallel" (v7x megacore gets work at B == 1); batch
    # is innermost and "arbitrary" so the PE block index is constant across it
    # and Pallas reuses the VMEM-resident PE tile instead of re-DMAing it.
    sem = ("parallel", "arbitrary" if n_row > 1 else "parallel")

    cost = pl.CostEstimate(
        flops=B * R * W,
        transcendentals=0,
        bytes_accessed=2 * B * R * W * dx                          # x read + out write
        + int(min(n_row * ts, pe_op.shape[0])) * W * dpe,          # PE read once
    )

    return pl.pallas_call(
        _add_pe_kernel,
        out_shape=jax.ShapeDtypeStruct((B, R, W), x3.dtype),
        grid_spec=pltpu.PrefetchScalarGridSpec(
            num_scalar_prefetch=0,
            grid=grid,
            in_specs=[
                pl.BlockSpec((bt, ts, W), lambda s, b: (b, s, 0)),
                pl.BlockSpec((ts, W), lambda s, b: (s, 0)),
            ],
            out_specs=pl.BlockSpec((bt, ts, W), lambda s, b: (b, s, 0)),
        ),
        compiler_params=pltpu.CompilerParams(
            dimension_semantics=sem,
            vmem_limit_bytes=_VMEM_LIMIT_BYTES,
        ),
        cost_estimate=cost,
    )(x3, pe_op)


def learned_positional_encoding(x, pe_weight):
    """x: (B, S, D); pe_weight: (max_len, D) f32. Returns x + pe_weight[:S] in x.dtype."""
    B, S, D = x.shape
    max_len = pe_weight.shape[0]
    assert S <= max_len, "sequence length exceeds max_len of the positional table"
    dx = jnp.dtype(x.dtype).itemsize
    sub = max(8, 32 // dx)          # sublane multiple for x's dtype (8 f32 / 16 bf16)

    if D % _LANES != 0 and (S * D) % _LANES == 0:
        # Lane-dense view of the flattened payload: pure reshape (no pad, no tail
        # slice -> no extra full-tensor HBM passes). The PE slice is reshaped and
        # pre-cast once (S*D elements only, not B*S*D).
        R, W = (S * D) // _LANES, _LANES
        per_row = 2 * W * 3 * dx
        ts = _pick_row_tile(R, sub, _VMEM_BUDGET_BYTES // per_row)
        x3 = x.reshape(B, R, W)
        pe2 = (
            jax.lax.slice(pe_weight, (0, 0), (S, D))
            .astype(x.dtype)
            .reshape(R, W)
        )
        return _run_add(x3, pe2, ts).reshape(B, S, D)

    # Native (B, S, D) layout: lane-dense stores when D % 128 == 0; otherwise D is
    # a full-extent block dim and the ragged lane tail costs a few masked stores,
    # which is far cheaper than pad + slice wrapper passes over the whole tensor.
    dpe = jnp.dtype(pe_weight.dtype).itemsize
    per_row = 2 * D * (2 * dx + dpe)
    ts = _pick_row_tile(S, sub, _VMEM_BUDGET_BYTES // per_row)
    if ts % 8 == 0 and int(pl.cdiv(S, ts)) * ts <= max_len:
        # Tiles of the full table cover rows [0, S): no wrapper-side slice/cast
        # HBM pass; the (tiny, hidden-under-DMA) cast happens inside the kernel.
        pe_op = pe_weight
    else:
        # Full-extent fallback (sublane-unaligned S): the PE operand's row count
        # must equal the block row count, so slice + pre-cast once.
        pe_op = jax.lax.slice(pe_weight, (0, 0), (S, D)).astype(x.dtype)
    return _run_add(x, pe_op, ts)


class LearnedPositionalEncodingJAX:
    """Deterministic re-implementation of the PyTorch module."""

    def __init__(self, dim_model, max_len=512, key=None):
        if key is None:
            key = jax.random.PRNGKey(0)
        self.d_model = dim_model
        # nn.Embedding weight initialised as randn(max_len, dim) / sqrt(dim).
        self.pe_weight = jax.random.normal(
            key, (max_len, dim_model), dtype=jnp.float32
        ) / np.sqrt(dim_model)

    def __call__(self, x):
        # NOTE: output keeps x.dtype (PyTorch bf16 x + f32 PE would promote to f32).
        return learned_positional_encoding(x, self.pe_weight)


if __name__ == "__main__":
    B, S, D = 2, 8, 32
    max_len = 512

    key = jax.random.PRNGKey(0)
    k_x, k_w = jax.random.split(key)

    module = LearnedPositionalEncodingJAX(dim_model=D, max_len=max_len, key=k_w)
    x = jax.random.normal(k_x, (B, S, D), dtype=jnp.float32)

    out = jax.block_until_ready(module(x))

    # Reference check in plain JAX (same semantics as the PyTorch forward).
    ref = x + module.pe_weight[:S][None, :, :]
    np.testing.assert_allclose(np.asarray(out), np.asarray(ref), rtol=1e-6, atol=1e-6)

    print("KERNEL_OK")
</pallas_src>

<mosaic_0001>
module attributes {stable_mosaic.version = 11 : i64} {
  func.func @_add_pe_kernel(%arg0: i32, %arg1: i32, %arg2: memref<2x2x128xf32, #tpu.memory_space<vmem>>, %arg3: memref<2x128xf32, #tpu.memory_space<vmem>>, %arg4: memref<2x2x128xf32, #tpu.memory_space<vmem>>) attributes {dimension_semantics = [#tpu.dimension_semantics<parallel>, #tpu.dimension_semantics<parallel>], iteration_bounds = array<i64: 1, 1>, scalar_prefetch = 0 : i64, scratch_operands = 0 : i64, tpu.core_type = #tpu.core_type<tc>, window_params = [{transform_indices = @transform_0, window_bounds = array<i64: 2, 2, 128>}, {transform_indices = @transform_1, window_bounds = array<i64: 2, 128>}, {transform_indices = @transform_2, window_bounds = array<i64: 2, 2, 128>}]} {
    %c0 = arith.constant 0 : index
    %c0_0 = arith.constant 0 : index
    %0 = vector.load %arg3[%c0, %c0_0] : memref<2x128xf32, #tpu.memory_space<vmem>>, vector<2x128xf32>
    %c0_1 = arith.constant 0 : index
    %c0_2 = arith.constant 0 : index
    %c0_3 = arith.constant 0 : index
    %1 = vector.load %arg2[%c0_1, %c0_2, %c0_3] : memref<2x2x128xf32, #tpu.memory_space<vmem>>, vector<2x2x128xf32>
    %2 = vector.shape_cast %0 : vector<2x128xf32> to vector<1x2x128xf32>
    %3 = vector.broadcast %2 : vector<1x2x128xf32> to vector<2x2x128xf32>
    %4 = arith.addf %1, %3 : vector<2x2x128xf32>
    %c0_4 = arith.constant 0 : index
    %c0_5 = arith.constant 0 : index
    %c0_6 = arith.constant 0 : index
    %5 = vector.load %arg4[%c0_4, %c0_5, %c0_6] : memref<2x2x128xf32, #tpu.memory_space<vmem>>, vector<2x2x128xf32>
    tpu.vector_store %arg4[%c0_4, %c0_5, %c0_6], %4 {strides = array<i32>} : memref<2x2x128xf32, #tpu.memory_space<vmem>>, vector<2x2x128xf32>,
    return
  }
  func.func @transform_0(%arg0: i32, %arg1: i32) -> (i32, i32, i32) {
    %c0_i32 = arith.constant 0 : i32
    %c0_i32_0 = arith.constant 0 : i32
    return %arg1, %arg0, %c0_i32 : i32, i32, i32
  }
  func.func @transform_1(%arg0: i32, %arg1: i32) -> (i32, i32) {
    %c0_i32 = arith.constant 0 : i32
    %c0_i32_0 = arith.constant 0 : i32
    return %arg0, %c0_i32 : i32, i32
  }
  func.func @transform_2(%arg0: i32, %arg1: i32) -> (i32, i32, i32) {
    %c0_i32 = arith.constant 0 : i32
    %c0_i32_0 = arith.constant 0 : i32
    return %arg1, %arg0, %c0_i32 : i32, i32, i32
  }
}

</mosaic_0001>

<bundles_post_ra>
// kernel: tpu_custom_call.1
= control target key start
LH: loop header
LB: loop body
LE: loop exit
PB: predicated region body
PF: predicated region fallthrough
CT: control target
= control target key end

     0   :  { %7 = vsyncpa [#allocation3], 0  ;;  %s154_s0 = inlined_call_operand.hbm [shape: f32[2,2,128], index: 0, kind: input, shape index: {}]   ;;  %s155_s1 = inlined_call_operand.vmem [shape: f32[2,128], index: 1, kind: input, shape index: {}]   ;;  %s156_s2 = inlined_call_operand.hbm [shape: f32[2,2,128], index: 2, kind: output, shape index: {}]  }
   0x1   :  { %8 = vsyncpa [#allocation4], 0  ;;  %s102_s9 = smov [#allocation2]   ;;  %s54_s13 = scalar_lea.hbm %s154_s0, 64 }
   0x2   :  { %s14_s10 = sshll.u32 %s102_s9, 4  ;;  %p55_p0 = scmp.ne.s32.totalorder %s154_s0, %s54_s13  ;;  %s15_s10 = int_to_ptr.vmem [resolvable:$true] %s14_s10 }
   0x3   :  { %p58_p1 = scmp.lt.u32.totalorder %s54_s13, %s154_s0 }
   0x5   :  { %p60_p2 = pnand %p58_p1, %p55_p0 }
   0x7   :  { %63 = shalt.err (!%p60_p2)
}
   0x8   :  { %s64_s18 = scalar_lea.vmem %s15_s10, 64  ;;  %p69_p4 = scmp.lt.s32.totalorder %s15_s10, %s15_s10 }
   0x9   :  { %p65_p3 = scmp.ne.s32.totalorder %s15_s10, %s64_s18  ;;  %p70_p5 = scmp.lt.s32.totalorder %s64_s18, %s64_s18 }
   0xb   :  { %p71_p6 = por %p70_p5, %p69_p4 }
   0xd   :  { %p72_p7 = pnand %p71_p6, %p65_p3 }
   0xf   :  { %75 = shalt.err (!%p72_p7)
}
  0x10   :  { %s103_s19 = smov 32   ;;  %s104_s20 = smov 2  }
  0x11   :  { %20 = dma.hbm_to_vmem [thread:$0]  %s154_s0, 64, %s15_s10, [#allocation3], %s103_s19, %s103_s19, %s104_s20  }
  0x12   :  { %98 = dma.done.wait [#allocation3], 64  }
  0x13   :  { %99 = vsyncadd [#allocation3], 4294967232  ;;  %s105_s23 = smov [#allocation5]   ;;  %v26_v0 = vld [vmem:[%s155_s1] sm:$0x3] }
  0x14   :  { %s38_s24 = sshll.u32 %s105_s23, 4  ;;  %v27_v1 = vld [vmem:[#allocation2] sm:$0x3]  ;;  %v28_v2 = vld [vmem:[#allocation2 + $0x2] sm:$0x3]  ;;  %s39_s24 = int_to_ptr.vmem [resolvable:$true] %s38_s24 }
  0x15   :  { %v29_v3 = vadd.f32 %v27_v1, %v26_v0  ;;  %v30_v4 = vadd.f32 %v28_v2, %v26_v0  ;;  %s76_s27 = scalar_lea.vmem %s39_s24, 64  ;;  %p81_p9 = scmp.lt.s32.totalorder %s39_s24, %s39_s24 }
  0x16   :  { %p77_p8 = scmp.ne.s32.totalorder %s39_s24, %s76_s27  ;;  %p82_p10 = scmp.lt.s32.totalorder %s76_s27, %s76_s27 }
  0x17   :  { %31 = vst [vmem:[#allocation5] sm:$0x3] %v29_v3  ;;  %32 = vst [vmem:[#allocation5 + $0x2] sm:$0x3] %v30_v4 }
  0x18   :  { %p83_p11 = por %p82_p10, %p81_p9 }
  0x1a   :  { %p84_p12 = pnand %p83_p11, %p77_p8 }
  0x1c   :  { %87 = shalt.err (!%p84_p12)
}
  0x1d   :  { %s88_s29 = scalar_lea.hbm %s156_s2, 64 }
  0x1e   :  { %p89_p13 = scmp.ne.s32.totalorder %s156_s2, %s88_s29  ;;  %p92_p0 = scmp.lt.u32.totalorder %s88_s29, %s156_s2 }
  0x20   :  { %p94_p1 = pnand %p92_p0, %p89_p13 }
  0x22   :  { %97 = shalt.err (!%p94_p1)
}
  0x23   :  { %44 = dma.vmem_to_hbm [thread:$0]  %s39_s24, 64, %s156_s2, [#allocation4], %s103_s19, %s103_s19, %s104_s20  }
  0x24   :  { %100 = dma.done.wait [#allocation4], 64  }
  0x25   :  { %101 = vsyncadd [#allocation4], 4294967232 }
  0x26   :  { %48 = vsyncpa [#allocation3], 1 }
  0x27   :  { %49 = vsyncpa [#allocation4], 1 }

</bundles_post_ra>
